<compile_context>
chip_gen: v7x
topology: tpu7x:2x2x1
jax: 0.10.0
libtpu: 0.0.40
codegen_flags: <defaults>
</compile_context>

<pallas_src>
import functools

import jax
import jax.numpy as jnp
from jax import lax
from jax.experimental import pallas as pl
from jax.experimental.pallas import tpu as pltpu

EPS = 1e-6          # matches PAM_Module.eps
NORM_EPS = 1e-12    # guards rsqrt against an all-zero column (negligible otherwise)


def _round_up(x, m):
    return ((x + m - 1) // m) * m


def _vmem_capacity_bytes():
    try:
        info = pltpu.get_tpu_info()
        cap = getattr(info, "vmem_capacity_bytes", None)
        if cap:
            return int(cap)
    except Exception:
        pass
    return 64 << 20   # v7x per-TensorCore size; conservative for v5e/v6e


def pam_kernel(x_ref, wvk_ref, bvk_ref, wq_ref, bq_ref, gamma_ref,
               o_ref, accm_ref, vsum_ref, ksum_ref, accm_bf_ref,
               *, n_true, need_mask):
    """Grid = (batch, pass, n_tile)."""
    C = x_ref.shape[1]
    TN = x_ref.shape[2]
    M = wq_ref.shape[0]

    p = pl.program_id(1)
    ni = pl.program_id(2)

    x = x_ref[0]                                        # (C, TN) f32

    if need_mask:
        # Only the last n tile has out-of-range lanes; the extra VPU work on full
        # tiles is a handful of vreg ops and is skipped statically when aligned.
        col = ni * TN + lax.broadcasted_iota(jnp.int32, (1, TN), 1)
        valid = col < n_true
        ones_row = valid.astype(jnp.float32)
        x = jnp.where(valid, x, 0.0)                    # scrub edge-block garbage (NaN-safe)
    else:
        ones_row = jnp.ones((1, TN), jnp.float32)

    xb = x.astype(jnp.bfloat16)

    # ---------------- pass 0: accumulate K/V statistics ----------------------
    @pl.when((p == 0) & (ni == 0))
    def _init():
        accm_ref[...] = jnp.zeros_like(accm_ref)
        vsum_ref[...] = jnp.zeros_like(vsum_ref)
        ksum_ref[...] = jnp.zeros_like(ksum_ref)

    @pl.when(p == 0)
    def _pass0():
        # Fused V & K 1x1 convolutions: rows [0:C] = V, [C:C+M] = K.
        vk = jnp.dot(wvk_ref[...], xb,
                     preferred_element_type=jnp.float32) + bvk_ref[...]
        v = vk[0:C, :]                                  # (C, TN)
        k = vk[C:C + M, :]                              # (M, TN)
        kn = k * lax.rsqrt(jnp.sum(k * k, axis=0, keepdims=True) + NORM_EPS)
        if need_mask:
            kn = kn * ones_row                          # drop padded columns
        ksum_ref[...] += jnp.sum(kn, axis=1, keepdims=True)

        # kn_aug = [kn ; ones]: the ones row folds value_sum into the same MXU pass.
        kn_aug = jnp.concatenate([kn, ones_row], axis=0).astype(jnp.bfloat16)
        acc = lax.dot_general(v.astype(jnp.bfloat16), kn_aug,
                              (((1,), (1,)), ((), ())),
                              preferred_element_type=jnp.float32)   # (C, M+1)
        accm_ref[...] += acc[:, :M]
        vsum_ref[...] += acc[:, M:M + 1]

    # cast the tiny accumulator to bf16 once per batch (not once per tile)
    @pl.when((p == 1) & (ni == 0))
    def _cast():
        accm_bf_ref[...] = accm_ref[...].astype(jnp.bfloat16)

    # ---------------- pass 1: per-tile output --------------------------------
    @pl.when(p == 1)
    def _pass1():
        gamma = gamma_ref[0, 0]
        q = jnp.dot(wq_ref[...], xb,
                    preferred_element_type=jnp.float32) + bq_ref[...]     # (M, TN)
        qn = q * lax.rsqrt(jnp.sum(q * q, axis=0, keepdims=True) + NORM_EPS)

        ksum_eps = ksum_ref[...] + EPS                                    # (M, 1)
        denom = jnp.float32(n_true) + jnp.sum(qn * ksum_eps,
                                              axis=0, keepdims=True)     # (1, TN)
        tailor = pl.reciprocal(denom, approx=True)

        # (C, M) @ (M, TN) + value_sum broadcast.
        t = jnp.dot(accm_bf_ref[...], qn.astype(jnp.bfloat16),
                    preferred_element_type=jnp.float32) + vsum_ref[...]   # (C, TN)
        o_ref[0] = (x + gamma * (t * tailor)).astype(o_ref.dtype)


def pam_module(x, params):
    B, C, H, W = x.shape
    N = H * W
    M = params["wq"].shape[0]

    vmem_cap = _vmem_capacity_bytes()
    n_pad = _round_up(N, 128)

    # Pipeline keeps ~2 x-blocks + 2 out-blocks live: ~16*C*TN bytes of tile data.
    blk_budget = int(0.55 * vmem_cap)
    tn_cap = max(128, (blk_budget // (16 * C)) // 128 * 128)
    if n_pad <= tn_cap:
        # Whole row resident: x block index identical for pass 0 and pass 1,
        # so x is DMA'd from HBM once per batch and reused across both passes.
        TN = n_pad
    else:
        # Byte-targeted streaming tiles (~1 MB x block), lane-aligned.
        TN = min(tn_cap, max(512, _round_up((1 << 20) // (4 * C), 128)))
    NT = pl.cdiv(N, TN)
    need_mask = (N % TN) != 0            # partial edge block handled in-kernel

    x_flat = x.reshape(B, C, N).astype(jnp.float32)

    # fused [V ; K] projection weights (bf16 feeds the MXU), f32 biases.
    wvk = jnp.concatenate([params["wv"], params["wk"]], axis=0).astype(jnp.bfloat16)
    bvk = jnp.concatenate([params["bv"], params["bk"]], axis=0).astype(jnp.float32)
    wq = params["wq"].astype(jnp.bfloat16)
    bq = params["bq"].astype(jnp.float32)
    gamma = params["gamma"].astype(jnp.float32)

    kernel = functools.partial(pam_kernel, n_true=N, need_mask=need_mask)

    blk_bytes = C * TN * 4
    # <= ~48 MiB on v7x (75% of 64 MiB), comfortably above the 16 MiB default on
    # v5e/v6e, and always enough for the double-buffered tiles + headroom.
    vmem_limit = int(min(0.75 * vmem_cap, max(16 << 20, 4 * blk_bytes + (8 << 20))))

    out_flat = pl.pallas_call(
        kernel,
        out_shape=jax.ShapeDtypeStruct((B, C, N), jnp.float32),
        grid_spec=pltpu.PrefetchScalarGridSpec(
            num_scalar_prefetch=0,
            grid=(B, 2, NT),
            in_specs=[
                pl.BlockSpec((1, C, TN), lambda b, p, n: (b, 0, n)),      # x tiles
                pl.BlockSpec((C + M, C), lambda b, p, n: (0, 0)),         # [Wv; Wk]
                pl.BlockSpec((C + M, 1), lambda b, p, n: (0, 0)),         # [bv; bk]
                pl.BlockSpec((M, C), lambda b, p, n: (0, 0)),             # Wq
                pl.BlockSpec((M, 1), lambda b, p, n: (0, 0)),             # bq
                pl.BlockSpec(memory_space=pltpu.MemorySpace.SMEM),        # gamma
            ],
            # pass 0 never writes; park its output index at tile 0 so the only
            # writebacks carry pass-1 data (flush happens on block-index change).
            out_specs=pl.BlockSpec((1, C, TN), lambda b, p, n: (b, 0, n * p)),
            scratch_shapes=[
                pltpu.VMEM((C, M), jnp.float32),       # K.V^T accumulator
                pltpu.VMEM((C, 1), jnp.float32),       # value_sum
                pltpu.VMEM((M, 1), jnp.float32),       # sum_n K
                pltpu.VMEM((C, M), jnp.bfloat16),      # bf16 copy for pass-1 MXU
            ],
        ),
        compiler_params=pltpu.CompilerParams(
            dimension_semantics=("parallel", "arbitrary", "arbitrary"),
            vmem_limit_bytes=vmem_limit),
    )(x_flat, wvk, bvk, wq, bq, gamma)

    # PyTorch reshapes (B, C, W*H) -> (B, C, height, width); identical flat
    # ordering for the square feature maps this module is used with.
    return out_flat.reshape(B, C, H, W)


def pam_reference(x, params):
    """Pure-JAX mirror of the PyTorch forward, for verification."""
    B, C, H, W = x.shape
    N = H * W
    xf = x.reshape(B, C, N).astype(jnp.float32)
    Q = jnp.einsum('mc,bcn->bmn', params["wq"], xf) + params["bq"][None]
    K = jnp.einsum('mc,bcn->bmn', params["wk"], xf) + params["bk"][None]
    V = jnp.einsum('mc,bcn->bmn', params["wv"], xf) + params["bv"][None]
    Qn = Q / jnp.linalg.norm(Q, axis=1, keepdims=True)
    Kn = K / jnp.linalg.norm(K, axis=1, keepdims=True)
    Qp = jnp.transpose(Qn, (0, 2, 1))                               # (B, N, M)
    tailor = 1.0 / (N + jnp.einsum('bnm,bm->bn', Qp, Kn.sum(-1) + EPS))
    vsum = V.sum(-1)[:, :, None]                                    # (B, C, 1)
    matrix = jnp.einsum('bmn,bcn->bmc', Kn, V)
    ms = vsum + jnp.einsum('bnm,bmc->bcn', Qp, matrix)
    wv = ms * tailor[:, None, :]
    gamma = params["gamma"][0, 0]
    return x + gamma * wv.reshape(B, C, H, W)


def make_params(key, C, scale=8):
    M = C // scale
    ks = jax.random.split(key, 6)
    s = 0.1
    return {
        "wq": s * jax.random.normal(ks[0], (M, C), jnp.float32),
        "bq": s * jax.random.normal(ks[1], (M, 1), jnp.float32),
        "wk": s * jax.random.normal(ks[2], (M, C), jnp.float32),
        "bk": s * jax.random.normal(ks[3], (M, 1), jnp.float32),
        "wv": s * jax.random.normal(ks[4], (C, C), jnp.float32),
        "bv": s * jax.random.normal(ks[5], (C, 1), jnp.float32),
        # PyTorch init is zeros; use a nonzero deterministic value so the
        # attention path actually contributes to the output.
        "gamma": jnp.full((1, 1), 0.1, jnp.float32),
    }


if __name__ == "__main__":
    key = jax.random.PRNGKey(0)
    kx, kp, kx2 = jax.random.split(key, 3)

    # in_places=32, scale=8 -> M=4; N=256 (lane-aligned, resident path).
    B, C, H, W = 2, 32, 16, 16
    x = jax.random.normal(kx, (B, C, H, W), jnp.float32)
    params = make_params(kp, C)

    out = jax.block_until_ready(pam_module(x, params))
    ref = pam_reference(x, params)
    assert out.shape == (B, C, H, W)
    assert jnp.allclose(out, ref, rtol=1e-2, atol=1e-2), "mismatch vs reference (aligned N)"

    # Unaligned N = 15*15 = 225 exercises the partial-edge-block / in-kernel
    # masking path (no wrapper pad / slice).
    x2 = jax.random.normal(kx2, (1, C, 15, 15), jnp.float32)
    out2 = jax.block_until_ready(pam_module(x2, params))
    ref2 = pam_reference(x2, params)
    assert out2.shape == (1, C, 15, 15)
    assert jnp.allclose(out2, ref2, rtol=1e-2, atol=1e-2), "mismatch vs reference (masked N)"

    print("KERNEL_OK")
</pallas_src>

<mosaic_0001>
module attributes {stable_mosaic.version = 11 : i64} {
  func.func @pam_kernel(%arg0: i32, %arg1: i32, %arg2: i32, %arg3: memref<1x32x256xf32, #tpu.memory_space<vmem>>, %arg4: memref<36x32xbf16, #tpu.memory_space<vmem>>, %arg5: memref<36x1xf32, #tpu.memory_space<vmem>>, %arg6: memref<4x32xbf16, #tpu.memory_space<vmem>>, %arg7: memref<4x1xf32, #tpu.memory_space<vmem>>, %arg8: memref<1x1xf32, #tpu.memory_space<smem>>, %arg9: memref<1x32x256xf32, #tpu.memory_space<vmem>>, %arg10: memref<32x4xf32, #tpu.memory_space<vmem>>, %arg11: memref<32x1xf32, #tpu.memory_space<vmem>>, %arg12: memref<4x1xf32, #tpu.memory_space<vmem>>, %arg13: memref<32x4xbf16, #tpu.memory_space<vmem>>) attributes {dimension_semantics = [#tpu.dimension_semantics<parallel>, #tpu.dimension_semantics<arbitrary>, #tpu.dimension_semantics<arbitrary>], iteration_bounds = array<i64: 2, 2, 1>, scalar_prefetch = 0 : i64, scratch_operands = 4 : i64, tpu.core_type = #tpu.core_type<tc>, window_params = [{transform_indices = @transform_0, window_bounds = array<i64: 1, 32, 256>}, {pipeline_mode = #tpu.pipeline_mode<synchronous>, transform_indices = @transform_1, window_bounds = array<i64: 36, 32>}, {pipeline_mode = #tpu.pipeline_mode<synchronous>, transform_indices = @transform_2, window_bounds = array<i64: 36, 1>}, {pipeline_mode = #tpu.pipeline_mode<synchronous>, transform_indices = @transform_3, window_bounds = array<i64: 4, 32>}, {pipeline_mode = #tpu.pipeline_mode<synchronous>, transform_indices = @transform_4, window_bounds = array<i64: 4, 1>}, {transform_indices = @transform_5, window_bounds = array<i64: 1, 1>}, {transform_indices = @transform_6, window_bounds = array<i64: 1, 32, 256>}]} {
    %c0 = arith.constant 0 : index
    %c0_0 = arith.constant 0 : index
    %c0_1 = arith.constant 0 : index
    %0 = vector.load %arg3[%c0, %c0_0, %c0_1] : memref<1x32x256xf32, #tpu.memory_space<vmem>>, vector<1x32x256xf32>
    %1 = vector.shape_cast %0 : vector<1x32x256xf32> to vector<32x256xf32>
    %cst = arith.constant 1.000000e+00 : f32
    %2 = vector.broadcast %cst : f32 to vector<1x256xf32>
    %3 = arith.truncf %1 : vector<32x256xf32> to vector<32x256xbf16>
    %c0_i32 = arith.constant 0 : i32
    %4 = arith.cmpi eq, %arg1, %c0_i32 : i32
    %c0_i32_2 = arith.constant 0 : i32
    %5 = arith.cmpi eq, %arg2, %c0_i32_2 : i32
    %6 = arith.andi %4, %5 : i1
    %7 = arith.extui %6 : i1 to i32
    %c0_i32_3 = arith.constant 0 : i32
    %8 = arith.cmpi ne, %7, %c0_i32_3 : i32
    scf.if %8 {
      %cst_10 = arith.constant 0.000000e+00 : f32
      %20 = vector.broadcast %cst_10 : f32 to vector<32x4xf32>
      %c0_11 = arith.constant 0 : index
      %c0_12 = arith.constant 0 : index
      %21 = vector.load %arg10[%c0_11, %c0_12] : memref<32x4xf32, #tpu.memory_space<vmem>>, vector<32x4xf32>
      tpu.vector_store %arg10[%c0_11, %c0_12], %20 {strides = array<i32>} : memref<32x4xf32, #tpu.memory_space<vmem>>, vector<32x4xf32>,
      %cst_13 = arith.constant 0.000000e+00 : f32
      %22 = vector.broadcast %cst_13 : f32 to vector<32x1xf32>
      %c0_14 = arith.constant 0 : index
      %c0_15 = arith.constant 0 : index
      %23 = vector.load %arg11[%c0_14, %c0_15] : memref<32x1xf32, #tpu.memory_space<vmem>>, vector<32x1xf32>
      tpu.vector_store %arg11[%c0_14, %c0_15], %22 {strides = array<i32>} : memref<32x1xf32, #tpu.memory_space<vmem>>, vector<32x1xf32>,
      %cst_16 = arith.constant 0.000000e+00 : f32
      %24 = vector.broadcast %cst_16 : f32 to vector<4x1xf32>
      %c0_17 = arith.constant 0 : index
      %c0_18 = arith.constant 0 : index
      %25 = vector.load %arg12[%c0_17, %c0_18] : memref<4x1xf32, #tpu.memory_space<vmem>>, vector<4x1xf32>
      tpu.vector_store %arg12[%c0_17, %c0_18], %24 {strides = array<i32>} : memref<4x1xf32, #tpu.memory_space<vmem>>, vector<4x1xf32>,
    } else {
    }
    %c0_i32_4 = arith.constant 0 : i32
    %9 = arith.cmpi eq, %arg1, %c0_i32_4 : i32
    %10 = arith.extui %9 : i1 to i32
    %c0_i32_5 = arith.constant 0 : i32
    %11 = arith.cmpi ne, %10, %c0_i32_5 : i32
    scf.if %11 {
      %c0_10 = arith.constant 0 : index
      %c0_11 = arith.constant 0 : index
      %20 = vector.load %arg4[%c0_10, %c0_11] : memref<36x32xbf16, #tpu.memory_space<vmem>>, vector<36x32xbf16>
      %cst_12 = arith.constant dense<0.000000e+00> : vector<36x256xf32>
      %21 = tpu.matmul %20, %3, %cst_12 {dimension_numbers = #tpu.dot_dimension_numbers<[1], [0], [0], [1], [0, 0, 1, 1], [], []>} : vector<36x32xbf16>, vector<32x256xbf16>, vector<36x256xf32> -> vector<36x256xf32>
      %c0_13 = arith.constant 0 : index
      %c0_14 = arith.constant 0 : index
      %22 = vector.load %arg5[%c0_13, %c0_14] : memref<36x1xf32, #tpu.memory_space<vmem>>, vector<36x1xf32>
      %23 = vector.broadcast %22 : vector<36x1xf32> to vector<36x256xf32>
      %24 = arith.addf %21, %23 : vector<36x256xf32>
      %25 = vector.extract_strided_slice %24 {offsets = [0, 0], sizes = [32, 256], strides = [1, 1]} : vector<36x256xf32> to vector<32x256xf32>
      %26 = vector.extract_strided_slice %24 {offsets = [32, 0], sizes = [4, 256], strides = [1, 1]} : vector<36x256xf32> to vector<4x256xf32>
      %27 = arith.mulf %26, %26 : vector<4x256xf32>
      %cst_15 = arith.constant dense<0.000000e+00> : vector<256xf32>
      %28 = vector.multi_reduction <add>, %27, %cst_15 [0] : vector<4x256xf32> to vector<256xf32>
      %29 = vector.shape_cast %28 : vector<256xf32> to vector<1x256xf32>
      %cst_16 = arith.constant 9.99999996E-13 : f32
      %30 = vector.broadcast %cst_16 : f32 to vector<1x256xf32>
      %31 = arith.addf %29, %30 : vector<1x256xf32>
      %32 = math.rsqrt %31 : vector<1x256xf32>
      %33 = vector.broadcast %32 : vector<1x256xf32> to vector<4x256xf32>
      %34 = arith.mulf %26, %33 : vector<4x256xf32>
      %c0_17 = arith.constant 0 : index
      %c0_18 = arith.constant 0 : index
      %35 = vector.load %arg12[%c0_17, %c0_18] : memref<4x1xf32, #tpu.memory_space<vmem>>, vector<4x1xf32>
      %cst_19 = arith.constant dense<0.000000e+00> : vector<4xf32>
      %36 = vector.multi_reduction <add>, %34, %cst_19 [1] : vector<4x256xf32> to vector<4xf32>
      %37 = vector.shape_cast %36 : vector<4xf32> to vector<4x1xf32>
      %38 = arith.addf %35, %37 : vector<4x1xf32>
      %c0_20 = arith.constant 0 : index
      %c0_21 = arith.constant 0 : index
      %39 = vector.load %arg12[%c0_20, %c0_21] : memref<4x1xf32, #tpu.memory_space<vmem>>, vector<4x1xf32>
      tpu.vector_store %arg12[%c0_20, %c0_21], %38 {strides = array<i32>} : memref<4x1xf32, #tpu.memory_space<vmem>>, vector<4x1xf32>,
      %40 = tpu.concatenate %34, %2 in 0 : vector<4x256xf32>, vector<1x256xf32> -> vector<5x256xf32>
      %41 = arith.truncf %40 : vector<5x256xf32> to vector<5x256xbf16>
      %42 = arith.truncf %25 : vector<32x256xf32> to vector<32x256xbf16>
      %cst_22 = arith.constant dense<0.000000e+00> : vector<32x5xf32>
      %43 = tpu.matmul %42, %41, %cst_22 {dimension_numbers = #tpu.dot_dimension_numbers<[1], [1], [0], [0], [0, 0, 1, 0], [], []>} : vector<32x256xbf16>, vector<5x256xbf16>, vector<32x5xf32> -> vector<32x5xf32>
      %c0_23 = arith.constant 0 : index
      %c0_24 = arith.constant 0 : index
      %44 = vector.load %arg10[%c0_23, %c0_24] : memref<32x4xf32, #tpu.memory_space<vmem>>, vector<32x4xf32>
      %45 = vector.extract_strided_slice %43 {offsets = [0, 0], sizes = [32, 4], strides = [1, 1]} : vector<32x5xf32> to vector<32x4xf32>
      %46 = arith.addf %44, %45 : vector<32x4xf32>
      %c0_25 = arith.constant 0 : index
      %c0_26 = arith.constant 0 : index
      %47 = vector.load %arg10[%c0_25, %c0_26] : memref<32x4xf32, #tpu.memory_space<vmem>>, vector<32x4xf32>
      tpu.vector_store %arg10[%c0_25, %c0_26], %46 {strides = array<i32>} : memref<32x4xf32, #tpu.memory_space<vmem>>, vector<32x4xf32>,
      %c0_27 = arith.constant 0 : index
      %c0_28 = arith.constant 0 : index
      %48 = vector.load %arg11[%c0_27, %c0_28] : memref<32x1xf32, #tpu.memory_space<vmem>>, vector<32x1xf32>
      %49 = vector.extract_strided_slice %43 {offsets = [0, 4], sizes = [32, 1], strides = [1, 1]} : vector<32x5xf32> to vector<32x1xf32>
      %50 = arith.addf %48, %49 : vector<32x1xf32>
      %c0_29 = arith.constant 0 : index
      %c0_30 = arith.constant 0 : index
      %51 = vector.load %arg11[%c0_29, %c0_30] : memref<32x1xf32, #tpu.memory_space<vmem>>, vector<32x1xf32>
      tpu.vector_store %arg11[%c0_29, %c0_30], %50 {strides = array<i32>} : memref<32x1xf32, #tpu.memory_space<vmem>>, vector<32x1xf32>,
    } else {
    }
    %c1_i32 = arith.constant 1 : i32
    %12 = arith.cmpi eq, %arg1, %c1_i32 : i32
    %c0_i32_6 = arith.constant 0 : i32
    %13 = arith.cmpi eq, %arg2, %c0_i32_6 : i32
    %14 = arith.andi %12, %13 : i1
    %15 = arith.extui %14 : i1 to i32
    %c0_i32_7 = arith.constant 0 : i32
    %16 = arith.cmpi ne, %15, %c0_i32_7 : i32
    scf.if %16 {
      %c0_10 = arith.constant 0 : index
      %c0_11 = arith.constant 0 : index
      %20 = vector.load %arg10[%c0_10, %c0_11] : memref<32x4xf32, #tpu.memory_space<vmem>>, vector<32x4xf32>
      %21 = arith.truncf %20 : vector<32x4xf32> to vector<32x4xbf16>
      %c0_12 = arith.constant 0 : index
      %c0_13 = arith.constant 0 : index
      %22 = vector.load %arg13[%c0_12, %c0_13] : memref<32x4xbf16, #tpu.memory_space<vmem>>, vector<32x4xbf16>
      tpu.vector_store %arg13[%c0_12, %c0_13], %21 {strides = array<i32>} : memref<32x4xbf16, #tpu.memory_space<vmem>>, vector<32x4xbf16>,
    } else {
    }
    %c1_i32_8 = arith.constant 1 : i32
    %17 = arith.cmpi eq, %arg1, %c1_i32_8 : i32
    %18 = arith.extui %17 : i1 to i32
    %c0_i32_9 = arith.constant 0 : i32
    %19 = arith.cmpi ne, %18, %c0_i32_9 : i32
    scf.if %19 {
      %c0_10 = arith.constant 0 : index
      %c0_11 = arith.constant 0 : index
      %20 = memref.load %arg8[%c0_10, %c0_11] : memref<1x1xf32, #tpu.memory_space<smem>>
      %c0_12 = arith.constant 0 : index
      %c0_13 = arith.constant 0 : index
      %21 = vector.load %arg6[%c0_12, %c0_13] : memref<4x32xbf16, #tpu.memory_space<vmem>>, vector<4x32xbf16>
      %cst_14 = arith.constant dense<0.000000e+00> : vector<4x256xf32>
      %22 = tpu.matmul %21, %3, %cst_14 {dimension_numbers = #tpu.dot_dimension_numbers<[1], [0], [0], [1], [0, 0, 1, 1], [], []>} : vector<4x32xbf16>, vector<32x256xbf16>, vector<4x256xf32> -> vector<4x256xf32>
      %c0_15 = arith.constant 0 : index
      %c0_16 = arith.constant 0 : index
      %23 = vector.load %arg7[%c0_15, %c0_16] : memref<4x1xf32, #tpu.memory_space<vmem>>, vector<4x1xf32>
      %24 = vector.broadcast %23 : vector<4x1xf32> to vector<4x256xf32>
      %25 = arith.addf %22, %24 : vector<4x256xf32>
      %26 = arith.mulf %25, %25 : vector<4x256xf32>
      %cst_17 = arith.constant dense<0.000000e+00> : vector<256xf32>
      %27 = vector.multi_reduction <add>, %26, %cst_17 [0] : vector<4x256xf32> to vector<256xf32>
      %28 = vector.shape_cast %27 : vector<256xf32> to vector<1x256xf32>
      %cst_18 = arith.constant 9.99999996E-13 : f32
      %29 = vector.broadcast %cst_18 : f32 to vector<1x256xf32>
      %30 = arith.addf %28, %29 : vector<1x256xf32>
      %31 = math.rsqrt %30 : vector<1x256xf32>
      %32 = vector.broadcast %31 : vector<1x256xf32> to vector<4x256xf32>
      %33 = arith.mulf %25, %32 : vector<4x256xf32>
      %c0_19 = arith.constant 0 : index
      %c0_20 = arith.constant 0 : index
      %34 = vector.load %arg12[%c0_19, %c0_20] : memref<4x1xf32, #tpu.memory_space<vmem>>, vector<4x1xf32>
      %cst_21 = arith.constant 9.99999997E-7 : f32
      %35 = vector.broadcast %cst_21 : f32 to vector<4x1xf32>
      %36 = arith.addf %34, %35 : vector<4x1xf32>
      %37 = vector.broadcast %36 : vector<4x1xf32> to vector<4x256xf32>
      %38 = arith.mulf %33, %37 : vector<4x256xf32>
      %cst_22 = arith.constant dense<0.000000e+00> : vector<256xf32>
      %39 = vector.multi_reduction <add>, %38, %cst_22 [0] : vector<4x256xf32> to vector<256xf32>
      %40 = vector.shape_cast %39 : vector<256xf32> to vector<1x256xf32>
      %cst_23 = arith.constant 2.560000e+02 : f32
      %41 = vector.broadcast %cst_23 : f32 to vector<1x256xf32>
      %42 = arith.addf %41, %40 : vector<1x256xf32>
      %43 = tpu.reciprocal %42 {approx = true} : vector<1x256xf32> -> vector<1x256xf32>
      %c0_24 = arith.constant 0 : index
      %c0_25 = arith.constant 0 : index
      %44 = vector.load %arg13[%c0_24, %c0_25] : memref<32x4xbf16, #tpu.memory_space<vmem>>, vector<32x4xbf16>
      %45 = arith.truncf %33 : vector<4x256xf32> to vector<4x256xbf16>
      %cst_26 = arith.constant dense<0.000000e+00> : vector<32x256xf32>
      %46 = tpu.matmul %44, %45, %cst_26 {dimension_numbers = #tpu.dot_dimension_numbers<[1], [0], [0], [1], [0, 0, 1, 1], [], []>} : vector<32x4xbf16>, vector<4x256xbf16>, vector<32x256xf32> -> vector<32x256xf32>
      %c0_27 = arith.constant 0 : index
      %c0_28 = arith.constant 0 : index
      %47 = vector.load %arg11[%c0_27, %c0_28] : memref<32x1xf32, #tpu.memory_space<vmem>>, vector<32x1xf32>
      %48 = vector.broadcast %47 : vector<32x1xf32> to vector<32x256xf32>
      %49 = arith.addf %46, %48 : vector<32x256xf32>
      %50 = vector.broadcast %43 : vector<1x256xf32> to vector<32x256xf32>
      %51 = arith.mulf %49, %50 : vector<32x256xf32>
      %52 = vector.broadcast %20 : f32 to vector<32x256xf32>
      %53 = arith.mulf %52, %51 : vector<32x256xf32>
      %54 = arith.addf %1, %53 : vector<32x256xf32>
      %c0_29 = arith.constant 0 : index
      %c0_30 = arith.constant 0 : index
      %c0_31 = arith.constant 0 : index
      %55 = vector.load %arg9[%c0_29, %c0_30, %c0_31] : memref<1x32x256xf32, #tpu.memory_space<vmem>>, vector<1x32x256xf32>
      %56 = vector.shape_cast %55 : vector<1x32x256xf32> to vector<32x256xf32>
      %57 = vector.shape_cast %54 : vector<32x256xf32> to vector<1x32x256xf32>
      tpu.vector_store %arg9[%c0_29, %c0_30, %c0_31], %57 {strides = array<i32>} : memref<1x32x256xf32, #tpu.memory_space<vmem>>, vector<1x32x256xf32>,
    } else {
    }
    return
  }
  func.func @transform_0(%arg0: i32, %arg1: i32, %arg2: i32) -> (i32, i32, i32) {
    %c0_i32 = arith.constant 0 : i32
    %c0_i32_0 = arith.constant 0 : i32
    return %arg0, %c0_i32, %arg2 : i32, i32, i32
  }
  func.func @transform_1(%arg0: i32, %arg1: i32, %arg2: i32) -> (i32, i32) {
    %c0_i32 = arith.constant 0 : i32
    %c0_i32_0 = arith.constant 0 : i32
    %c0_i32_1 = arith.constant 0 : i32
    return %c0_i32, %c0_i32_0 : i32, i32
  }
  func.func @transform_2(%arg0: i32, %arg1: i32, %arg2: i32) -> (i32, i32) {
    %c0_i32 = arith.constant 0 : i32
    %c0_i32_0 = arith.constant 0 : i32
    %c0_i32_1 = arith.constant 0 : i32
    return %c0_i32, %c0_i32_0 : i32, i32
  }
  func.func @transform_3(%arg0: i32, %arg1: i32, %arg2: i32) -> (i32, i32) {
    %c0_i32 = arith.constant 0 : i32
    %c0_i32_0 = arith.constant 0 : i32
    %c0_i32_1 = arith.constant 0 : i32
    return %c0_i32, %c0_i32_0 : i32, i32
  }
  func.func @transform_4(%arg0: i32, %arg1: i32, %arg2: i32) -> (i32, i32) {
    %c0_i32 = arith.constant 0 : i32
    %c0_i32_0 = arith.constant 0 : i32
    %c0_i32_1 = arith.constant 0 : i32
    return %c0_i32, %c0_i32_0 : i32, i32
  }
  func.func @transform_5(%arg0: i32, %arg1: i32, %arg2: i32) -> (i32, i32) {
    %c0_i32 = arith.constant 0 : i32
    %c0_i32_0 = arith.constant 0 : i32
    %c0_i32_1 = arith.constant 0 : i32
    return %c0_i32, %c0_i32_0 : i32, i32
  }
  func.func @transform_6(%arg0: i32, %arg1: i32, %arg2: i32) -> (i32, i32, i32) {
    %0 = arith.muli %arg2, %arg1 : i32
    %c0_i32 = arith.constant 0 : i32
    %c0_i32_0 = arith.constant 0 : i32
    return %arg0, %c0_i32, %0 : i32, i32, i32
  }
}

</mosaic_0001>

<bundles_post_ra>
// kernel: tpu_custom_call.1
= control target key start
LH: loop header
LB: loop body
LE: loop exit
PB: predicated region body
PF: predicated region fallthrough
CT: control target
= control target key end

     0   :  { %s1566_s0 = inlined_call_operand.hbm [shape: f32[2,32,256], index: 0, kind: input, shape index: {}]   ;;  %s1567_s1 = inlined_call_operand.vmem [shape: bf16[36,32], index: 1, kind: input, shape index: {}]   ;;  %s1568_s2 = inlined_call_operand.vmem [shape: f32[36,1], index: 2, kind: input, shape index: {}]   ;;  %s1569_s3 = inlined_call_operand.vmem [shape: bf16[4,32], index: 3, kind: input, shape index: {}]   ;;  %s1570_s4 = inlined_call_operand.vmem [shape: f32[4,1], index: 4, kind: input, shape index: {}]   ;;  %s1571_s5 = inlined_call_operand.<no memory space> [shape: f32[1,1], index: 5, kind: input, shape index: {}]   ;;  %s1572_s6 = inlined_call_operand.hbm [shape: f32[2,32,256], index: 6, kind: output, shape index: {}]  }
   0x1   :  { %11 = sst [smem:[#allocation6]] %s1571_s5 }
   0x2   :  { %12 = vsyncpa [#allocation8], 0 }
   0x3   :  { %14 = vsyncpa [#allocation8 + $0x1], 0 }
   0x4   :  { %15 = vsyncpa [#allocation9], 0 }
   0x5   :  { %17 = vsyncpa [#allocation9 + $0x1], 0  ;;  %s1259_s23 = smov 0   ;;  %s1261_s24 = smov 0  }
   0x6   :  { %s1263_s25 = smov 0   ;;  %s1265_s26 = smov 0  }
   0x7   :  { %s1267_s27 = smov 0   ;;  %s1269_s28 = smov 0  }
   0x8   :  { %s1271_s29 = smov 0   ;;  %s1273_s30 = smov 0  }
   0x9 LB: > { %s943_s5 = sadd.s32 4294967295, %s1209_s30   ;;  %s944_s7 = sadd.s32 4294967294, %s1209_s30   ;;  %s1209_s30 = sphi %s1273_s30, %s23_s30   ;;  %s1205_s29 = sphi %s1271_s29, %s1588_s29   ;;  %s1201_s28 = sphi %s1269_s28, %s1587_s28   ;;  %s1197_s27 = sphi %s1267_s27, %s1586_s27   ;;  %s1193_s26 = sphi %s1265_s26, %s1585_s26   ;;  %s1189_s25 = sphi %s1263_s25, %s1584_s25   ;;  %s1185_s24 = sphi %s1261_s24, %s1583_s24   ;;  %s1181_s23 = sphi %s1259_s23, %s1582_s23  }
   0xa   : > { %s38_s8 = sadd.s32 1, %s1201_s28  ;;  %s42_s9 = sadd.s32 1, %s1205_s29 }
   0xb   : > { %p40_p0 = scmp.ge.s32.totalorder %s38_s8, 2  ;;  %s51_s10 = sadd.s32 1, %s1189_s25 }
   0xc   : > { %p58_p1 = scmp.ne.s32.totalorder %s1189_s25, %s1185_s24  ;;  %p59_p2 = scmp.eq.s32.totalorder %s1209_s30, 0 }
   0xd   : > { %s1590_s8 = smov (%p40_p0, %s38_s8), 0  ;;  %s1592_s9 = smov (!%p40_p0, %s42_s9), %s1205_s29 }
   0xe   : > { %p1310_p3 = por %p59_p2, %p58_p1  ;;  %p64_p4 = scmp.ne.s32.totalorder %s1185_s24, %s1181_s23 }
   0xf   : > { %p44_p5 = scmp.ge.s32.totalorder %s1592_s9, 2  ;;  %p65_p6 = scmp.eq.s32.totalorder %s943_s5, 0 }
  0x10   : > { %p197_p7 = scmp.eq.s32.totalorder %s943_s5, 3  ;;  %p203_p8 = scmp.eq.s32.totalorder %s944_s7, 3 }
  0x11   : > { %s1594_s9 = smov (%p44_p5, %s1592_s9), 0  ;;  %p1318_p9 = por %p65_p6, %p64_p4 }
  0x12   : > { %p1322_p10 = por %p197_p7, %p58_p1  ;;  %s46_s14 = ssub.s32 %s1205_s29, %s1594_s9 }
  0x13   : > { %p1328_p11 = por %p203_p8, %p64_p4  ;;  %p49_p12 = scmp.eq.s32.totalorder %s46_s14, 0 }
  0x14   : > { %s1576_s13 = scalar_select %p1322_p10, 1, 0 }
  0x15   : > { %s1577_s15 = scalar_select %p1328_p11, 1, 0 }
  0x16   : > { %p988_p13 = scmp.lt.s32.totalorder %s1209_s30, 4  ;;  %s238_s16 = sand.u32 1, %s1189_s25  }
  0x17   : > { %s1335_s17 = scalar_select %p49_p12, %s1189_s25, %s51_s10  }
  0x18   : > { %s947_s18 = sshll.u32 %s238_s16, 6  ;;  %s972_s19 = sshll.u32 %s1205_s29, 10 }
  0x19   : > { %s1341_s22 = scalar_lea.hbm %s1566_s0, %s972_s19  ;;  %s242_s5 = scalar_lea.vmem [#allocation7], %s947_s18 }
  0x1a   : > { %s251_s7 = sshll.u32 %s242_s5, 4  ;;  %p1347_p0 = pnand %p988_p13, %p1310_p3  ;;  %s1343_s7 = int_to_ptr.vmem [resolvable:$true] %s251_s7 }
  0x1b   : > { %s1352_s10 = scalar_lea.sflag [#allocation8], %s238_s16  ;;  %s1081_s19 = scalar_lea.hbm %s1341_s22, 1024 }
  0x1c   : > { %p1082_p2 = scmp.ne.s32.totalorder %s1341_s22, %s1081_s19  ;;  %p1083_p4 = pneg %p1347_p0 }
  0x1d   : > { %s1086_s11 = scalar_lea.hbm %s1566_s0, 2048  ;;  %p1087_p3 = scmp.lt.u32.totalorder %s1341_s22, %s1566_s0 }
  0x1e   : > { %p1084_p5 = pnand %p1083_p4, %p1082_p2  ;;  %p1088_p7 = scmp.lt.u32.totalorder %s1086_s11, %s1081_s19 }
  0x1f   : > { %p1090_p12 = scmp.lt.u32.totalorder %s1081_s19, %s1341_s22 }
  0x20   : > { %p1085_p6 = pneg %p1084_p5  ;;  %p1089_p8 = por %p1088_p7, %p1087_p3 }
  0x22   : > { %p1091_p13 = por %p1090_p12, %p1089_p8 }
  0x24   : > { %p1092_p1 = pnand %p1091_p13, %p1085_p6 }
  0x26   : > { %1095 = shalt.err (!%p1092_p1)
}
  0x27   : > { %s1096_s16 = scalar_lea.vmem %s1343_s7, 1024  ;;  %s1211_s18 = smov [#allocation7]  }
  0x28   : > { %p1097_p2 = scmp.ne.s32.totalorder %s1343_s7, %s1096_s16  ;;  %s1101_s20 = sshll.u32 %s1211_s18, 4  ;;  %s1102_s20 = int_to_ptr.vmem [resolvable:$false] %s1101_s20 }
  0x29   : > { %s1103_s21 = scalar_lea.vmem %s1102_s20, 2048  ;;  %p1104_p10 = scmp.lt.s32.totalorder %s1343_s7, %s1102_s20 }
  0x2a   : > { %p1099_p5 = pnand %p1097_p2, %p1083_p4  ;;  %p1105_p3 = scmp.lt.s32.totalorder %s1103_s21, %s1096_s16 }
  0x2c   : > { %p1100_p11 = pneg %p1099_p5  ;;  %p1106_p7 = por %p1105_p3, %p1104_p10 }
  0x2e   : > { %p1107_p8 = pnand %p1106_p7, %p1100_p11 }
  0x30   : > { %1110 = shalt.err (!%p1107_p8)
}
  0x31   : > { %s1212_s19 = smov 256   ;;  %s1213_s11 = smov 16  }
  0x32   : > { %983 = dma.hbm_to_vmem [thread:$0]  (!%p1347_p0), %s1341_s22, 1024, %s1343_s7, %s1352_s10, %s1212_s19, %s1212_s19, %s1213_s11  }
  0x33   : > { %p259_p1 = scmp.lt.s32.totalorder %s1209_s30, 5  ;;  %p1579_p4 = scmp.ge.s32.totalorder %s1209_s30, 1 }
  0x35   : > { %p260_p6 = pnand %p1579_p4, %p259_p1 }
  0x36   : > { %s1384_s5 = sand.u32 (!%p260_p6), 1, %s1185_s24  }
  0x37   : > { %263 = sbr.rel (%p260_p6) target bundleno = 1222 (0x4c6), region = 44  ;;  %s951_s16 = sshll.u32 (!%p260_p6), %s1384_s5, 6 }
  0x38   : > { %s266_s18 = scalar_lea.sflag (!%p260_p6), [#allocation8], %s1384_s5  ;;  %s269_s20 = scalar_lea.vmem (!%p260_p6), [#allocation7], %s951_s16 }
  0x3e   : > { %1172 = dma.done.wait (%p1318_p9), %s266_s18, 1024  }
  0x3f   : > { %1174 = vsyncadd (%p1318_p9), %s266_s18, 4294966272  ;;  %p314_p10 = scmp.eq.s32.totalorder %s1193_s26, 0  ;;  %v1393_v0 = vld [vmem:[%s269_s20] sm:$0xff]  ;;  %v1395_v1 = vld [vmem:[%s269_s20 + $0x8] sm:$0xff]  ;;  %s1425_s12 = scalar_lea.vmem [#allocation10], %s951_s16 }
  0x40   : > { %v1397_v2 = vld [vmem:[%s269_s20 + $0x10] sm:$0xff]  ;;  %v1399_v3 = vld [vmem:[%s269_s20 + $0x18] sm:$0xff]  ;;  %v1401_v4 = vld [vmem:[%s269_s20 + $0x20] sm:$0xff]  ;;  %vm320_vm0 = vcmask (%p314_p10), 31744   ;;  %vm325_vm1 = vcmask (%p314_p10), 7168   ;;  %vm330_vm2 = vcmask (%p314_p10), 3072  }
  0x41   : > { %v1403_v5 = vld [vmem:[%s269_s20 + $0x28] sm:$0xff]  ;;  %v1407_v6 = vpack.c.bf16 %v1397_v2, %v1393_v0  ;;  %v1409_v7 = vld [vmem:[%s269_s20 + $0x30] sm:$0xff]  ;;  %v1411_v8 = vld [vmem:[%s269_s20 + $0x38] sm:$0xff]  ;;  %v1415_v9 = vpack.c.bf16 %v1399_v3, %v1395_v1  ;;  %319 = sbr.rel (!%p314_p10) target bundleno = 72 (0x48), region = 52  ;;  %v1214_v12 = vmov (%p314_p10), 0.0  }
  0x42   : > { %v1419_v10 = vpack.c.bf16 %v1409_v7, %v1401_v4  ;;  %v1423_v11 = vpack.c.bf16 %v1411_v8, %v1403_v5  ;;  %321 = vst.msk [vmem:[#allocation2] sm:$0xff] (%p314_p10), %vm320_vm0, %v1214_v12  ;;  %322 = vst.msk [vmem:[#allocation2 + $0x8] sm:$0xff] (%p314_p10), %vm320_vm0, %v1214_v12 }
  0x43   : > { %323 = vst.msk [vmem:[#allocation2 + $0x10] sm:$0xff] (%p314_p10), %vm320_vm0, %v1214_v12  ;;  %324 = vst.msk [vmem:[#allocation2 + $0x18] sm:$0xff] (%p314_p10), %vm320_vm0, %v1214_v12 }
  0x44   : > { %326 = vst.msk [vmem:[#allocation3] sm:$0xff] (%p314_p10), %vm325_vm1, %v1214_v12  ;;  %327 = vst.msk [vmem:[#allocation3 + $0x8] sm:$0xff] (%p314_p10), %vm325_vm1, %v1214_v12 }
  0x45   : > { %328 = vst.msk [vmem:[#allocation3 + $0x10] sm:$0xff] (%p314_p10), %vm325_vm1, %v1214_v12  ;;  %329 = vst.msk [vmem:[#allocation3 + $0x18] sm:$0xff] (%p314_p10), %vm325_vm1, %v1214_v12 }
  0x46   : > { %331 = vst.msk [vmem:[#allocation4] sm:$0xf] (%p314_p10), %vm330_vm2, %v1214_v12 }
  0x48 PF: > { %p954_p9 = scmp.ne.s32.totalorder %s1193_s26, 0 }
  0x49   : > { %393 = vmatprep.subr.bf16.mxu0 (!%p954_p9), %v1415_v9  ;;  %v1215_v13 = vmov (!%p954_p9), 0   ;;  %v344_v14 = vld [vmem:[%s1568_s2 + $0x20] sm:$0xf] (!%p954_p9)  ;;  %v341_v15 = vld [vmem:[%s1568_s2 + $0x8] sm:$0xff] (!%p954_p9)  ;;  %vm383_vm3 = vcmask (!%p954_p9), 261120   ;;  %v342_v18 = vld [vmem:[%s1568_s2 + $0x10] sm:$0xff] (!%p954_p9) }
  0x4a   : > { %334 = sbr.rel (%p954_p9) target bundleno = 695 (0x2b7), region = 56  ;;  %394 = vmatpush1.bf16.msra.mxu0 (!%p954_p9), %v1407_v6  ;;  %425 = vmatprep.mubr.bf16.mxu0 (!%p954_p9), %v1215_v13  ;;  %v1064_v16 = vld [vmem:[%s1567_s1] sm:$0xff] (!%p954_p9)   ;;  %v343_v19 = vld [vmem:[%s1568_s2 + $0x18] sm:$0xff] (!%p954_p9)  ;;  %v1065_v20 = vld [vmem:[%s1567_s1 + $0x8] sm:$0xff] (!%p954_p9)   ;;  %vm456_vm4 = vcmask (!%p954_p9), 1043456   ;;  %vm484_vm5 = vcmask (!%p954_p9), 3072  }
  0x4b   : > { %395 = vmatprep.subr.bf16.mxu0 (!%p954_p9), %v1423_v11  ;;  %1062 = vset.pattern.permute.xlu0 (!%p954_p9), %v1215_v13  ;;  %v340_v17 = vld [vmem:[%s1568_s2] sm:$0xff] (!%p954_p9)  ;;  %v1066_v21 = vld [vmem:[%s1567_s1 + $0x10] ss:$0 sps:$4 sm:$0x33] (!%p954_p9)   ;;  %vm551_vm6 = vcmask (!%p954_p9), 31744   ;;  %s1216_s11 = smov (!%p954_p9), 124  }
  0x4c   : > { %1063 = vset.pattern.permute.xlu1 (!%p954_p9), %v1215_v13  ;;  %367 = vperm.xlu0 (!%p954_p9), %1062, %v344_v14   ;;  %vm580_vm7 = vcmask (!%p954_p9), 7168  }
  0x4d   : > { %352 = vperm.xlu1 (!%p954_p9), %1063, %v341_v15  }
  0x4e   : > { %396 = vmatpush1.bf16.msra.mxu0 (!%p954_p9), %v1419_v10 }
  0x50   : > { %347 = vperm.xlu0 (!%p954_p9), %1062, %v340_v17  }
  0x51   : > { %958 = vmatmul.mubr.msk.bf16.vlgmr.msra.gmra.mrb[0].mxu0 %vm383_vm3, %v1064_v16  ;;  %357 = vperm.xlu1 %1063, %v342_v18  }
  0x52   : > { %435 = vmatprep.mubr.bf16.mxu0 %v1215_v13 }
  0x54   : > { %362 = vperm.xlu0 %1062, %v343_v19  }
  0x59   : > { %959 = vmatmul.mubr.msk.bf16.gmra.mrb[4].mxu0 %vm383_vm3, %v1065_v20 }
  0x5a   : > { %445 = vmatprep.mubr.bf16.mxu0 %v1215_v13 }
  0x61   : > { %960 = vmatmul.mubr.msk.bf16.gmra.mrb[8].mxu0 %vm383_vm3, %v1066_v21 }
  0xcb   : > { %v368_v22 = vpop.permute.xlu0 %367 }
  0xcc   : > { %v353_v23 = vpop.permute.xlu1 %352 }
  0xcf   : > { %v348_v24 = vpop.permute.xlu0 %347 }
  0xd0   : > { %v358_v35 = vpop.permute.xlu1 %357 }
  0xd3   : > { %v363_v37 = vpop.permute.xlu0 %362 }
 0x124   : > { %v427_v25 = vpop.f32.mrb[0].mxu0 }
 0x125   : > { %v429_v26 = vpop.f32.mrb[1].mxu0  ;;  %v428_v28 = vadd.f32 %v427_v25, %v348_v24 }
 0x126   : > { %v431_v27 = vpop.f32.mrb[2].mxu0  ;;  %v430_v31 = vadd.f32 %v429_v26, %v348_v24 }
 0x127   : > { %v432_v29 = vadd.f32 %v431_v27, %v353_v23  ;;  %v433_v30 = vpop.f32.mrb[3].mxu0 }
 0x128   : > { %v434_v32 = vadd.f32 %v433_v30, %v353_v23  ;;  %v477_v30 = vld [vmem:[#allocation4] sm:$0xf] }
 0x129   : > { %v490_v33 = vpack.c.bf16 %v432_v29, %v428_v28 }
 0x12a   : > { %v491_v34 = vpack.c.bf16 %v434_v32, %v430_v31 }
 0x12c   : > { %v437_v36 = vpop.f32.mrb[4].mxu0  ;;  %526 = vmatprep.mubr.bf16.mxu1 %v491_v34  ;;  %v543_v34 = vld [vmem:[#allocation2] sm:$0xff] }
 0x12d   : > { %v439_v38 = vpop.f32.mrb[5].mxu0  ;;  %v438_v40 = vadd.f32 %v437_v36, %v358_v35  ;;  %v544_v36 = vld [vmem:[#allocation2 + $0x8] sm:$0xff] }
 0x12e   : > { %v441_v39 = vpop.f32.mrb[6].mxu0  ;;  %v440_v43 = vadd.f32 %v439_v38, %v358_v35 }
 0x12f   : > { %v442_v41 = vadd.f32 %v441_v39, %v363_v37  ;;  %v443_v42 = vpop.f32.mrb[7].mxu0 }
 0x130   : > { %v444_v44 = vadd.f32 %v443_v42, %v363_v37 }
 0x131   : > { %v492_v45 = vpack.c.bf16 %v442_v41, %v438_v40  ;;  %v545_v41 = vld [vmem:[#allocation2 + $0x10] sm:$0xff] }
 0x132   : > { %v493_v46 = vpack.c.bf16 %v444_v44, %v440_v43  ;;  %v546_v43 = vld [vmem:[#allocation2 + $0x18] sm:$0xff] }
 0x134   : > { %v447_v47 = vpop.f32.mrb[8].mxu0 }
 0x135   : > { %v448_v48 = vadd.f32 %v447_v47, %v368_v22  ;;  %v449_v49 = vpop.f32.mrb[9].mxu0 }
 0x136   : > { %v450_v50 = vadd.f32 %v449_v49, %v368_v22  ;;  %v451_v51 = vpop.f32.mrb[10].mxu0  ;;  %v556_v49 = vld [vmem:[#allocation3] sm:$0xff] }
 0x137   : > { %v454_v52 = vmul.f32 %v448_v48, %v448_v48  ;;  %v452_v53 = vpop.f32.mrb[11].mxu0 }
 0x138   : > { %v455_v54 = vmul.f32 %v450_v50, %v450_v50 }
 0x139   : > { %v457_v55 = vsel %vm456_vm4, %v454_v52, 0.0  ;;  %v557_v52 = vld [vmem:[#allocation3 + $0x8] sm:$0xff] }
 0x13a   : > { %v458_v56 = vrot.slane %v457_v55, 4  ;;  %v464_v57 = vsel %vm456_vm4, %v455_v54, 0.0 }
 0x13b   : > { %v465_v58 = vrot.slane %v464_v57, 4 }
 0x13c   : > { %v459_v59 = vadd.f32 %v458_v56, %v457_v55  ;;  %v558_v55 = vld [vmem:[#allocation3 + $0x10] sm:$0xff] }
 0x13d   : > { %v466_v60 = vadd.f32 %v465_v58, %v464_v57  ;;  %v559_v58 = vld [vmem:[#allocation3 + $0x18] sm:$0xff] }
 0x13e   : > { %v460_v61 = vrot.slane %v459_v59, 2 }
 0x13f   : > { %v467_v62 = vrot.slane %v466_v60, 2 }
 0x140   : > { %v461_v63 = vadd.f32 %v460_v61, %v459_v59 }
 0x141   : > { %v468_v12 = vadd.f32 %v467_v62, %v466_v60 }
 0x142   : > { %v462_v13 = vrot.slane %v461_v63, 1 }
 0x143   : > { %v469_v14 = vrot.slane %v468_v12, 1 }
 0x144   : > { %v463_v15 = vadd.f32 %v462_v13, %v461_v63 }
 0x145   : > { %v470_v16 = vadd.f32 %v469_v14, %v468_v12 }
 0x146   : > { %v471_v17 = vadd.f32 1e-12, %v463_v15 }
 0x147   : > { %v472_v18 = vadd.f32 1e-12, %v470_v16 }
 0x148   : > { %1067 = vrsqrt.f32 %v471_v17 }
 0x149   : > { %1069 = vrsqrt.f32 %v472_v18 }
 0x152   : > { %v1068_v19 = vpop.eup %1067 }
 0x153   : > { %v1070_v20 = vpop.eup %1069  ;;  %v475_v21 = vmul.f32 %v1068_v19, %v448_v48 }
 0x154   : > { %v476_v22 = vmul.f32 %v1070_v20, %v450_v50 }
 0x155   : > { %v478_v23 = vsel %vm456_vm4, %v475_v21, 0.0  ;;  %v486_v24 = vsel %vm456_vm4, %v475_v21, 1.0 }
 0x156   : > { %v487_v25 = vsel %vm456_vm4, %v476_v22, 1.0  ;;  %v479_v26 = vsel %vm456_vm4, %v476_v22, 0.0  ;;  %v488_v29 = vpack.c.bf16 %v486_v24, %v486_v24 }
 0x157   : > { %v489_v27 = vpack.c.bf16 %v487_v25, %v487_v25  ;;  %v480_v28 = vadd.f32 %v479_v26, %v478_v23 }
 0x159   : > { %494 = vmatprep.subr.bf16.mxu1 %v489_v27  ;;  %481 = vadd.xlane.f32.xlu1 %v480_v28 }
 0x15a   : > { %495 = vmatpush1.bf16.xpose.msra.mxu1 %v488_v29 }
 0x161   : > { %527 = vmatmul.mubr.bf16.vlgmr.msra.gmra.mrb[0].mxu1 %v490_v33 }
 0x162   : > { %534 = vmatprep.mubr.bf16.mxu1 %v493_v46 }
 0x169   : > { %535 = vmatmul.mubr.bf16.gmra.mrb[4].mxu1 %v492_v45 }
 0x1e6   : > { %v482_v31 = vpop.xlane.xlu1 %481 }
 0x1e7   : > { %v483_v32 = vadd.f32 %v482_v31, %v477_v30 }
 0x1e9   : > { %485 = vst.msk [vmem:[#allocation4] sm:$0xf] %vm484_vm5, %v483_v32 }
 0x234   : > { %v528_v35 = vpop.f32.mrb[0].mxu1 }
 0x235   : > { %v547_v37 = vadd.f32 %v543_v34, %v528_v35  ;;  %564 = vrot.lane.b32.xlu0 %v528_v35, %s1216_s11  ;;  %v530_v38 = vpop.f32.mrb[1].mxu1 }
 0x236   : > { %v531_v39 = vpop.f32.mrb[2].mxu1 }
 0x237   : > { %552 = vst.msk [vmem:[#allocation2] sm:$0xff] %vm551_vm6, %v547_v37  ;;  %v548_v40 = vadd.f32 %v544_v36, %v531_v39  ;;  %v533_v33 = vpop.f32.mrb[3].mxu1 }
 0x239   : > { %553 = vst.msk [vmem:[#allocation2 + $0x8] sm:$0xff] %vm551_vm6, %v548_v40  ;;  %566 = vrot.lane.b32.xlu0 %v531_v39, %s1216_s11 }
 0x23c   : > { %v536_v42 = vpop.f32.mrb[4].mxu1 }
 0x23d   : > { %v549_v44 = vadd.f32 %v545_v41, %v536_v42  ;;  %568 = vrot.lane.b32.xlu0 %v536_v42, %s1216_s11  ;;  %v538_v45 = vpop.f32.mrb[5].mxu1 }
 0x23e   : > { %v539_v46 = vpop.f32.mrb[6].mxu1 }
 0x23f   : > { %554 = vst.msk [vmem:[#allocation2 + $0x10] sm:$0xff] %vm551_vm6, %v549_v44  ;;  %v550_v47 = vadd.f32 %v546_v43, %v539_v46  ;;  %v541_v48 = vpop.f32.mrb[7].mxu1 }
 0x241   : > { %555 = vst.msk [vmem:[#allocation2 + $0x18] sm:$0xff] %vm551_vm6, %v550_v47  ;;  %570 = vrot.lane.b32.xlu0 %v539_v46, %s1216_s11 }
 0x2a7   : > { %v565_v50 = vpop.permute.xlu0 %564 }
 0x2a8   : > { %v576_v51 = vadd.f32 %v565_v50, %v556_v49 }
 0x2aa   : > { %581 = vst.msk [vmem:[#allocation3] sm:$0xff] %vm580_vm7, %v576_v51 }
 0x2ab   : > { %v567_v53 = vpop.permute.xlu0 %566 }
 0x2ac   : > { %v577_v54 = vadd.f32 %v567_v53, %v557_v52 }
 0x2ae   : > { %582 = vst.msk [vmem:[#allocation3 + $0x8] sm:$0xff] %vm580_vm7, %v577_v54 }
 0x2af   : > { %v569_v56 = vpop.permute.xlu0 %568 }
 0x2b0   : > { %v578_v57 = vadd.f32 %v569_v56, %v558_v55 }
 0x2b2   : > { %583 = vst.msk [vmem:[#allocation3 + $0x10] sm:$0xff] %vm580_vm7, %v578_v57 }
 0x2b3   : > { %v571_v59 = vpop.permute.xlu0 %570 }
 0x2b4   : > { %v579_v60 = vadd.f32 %v571_v59, %v559_v58 }
 0x2b6   : > { %584 = vst.msk [vmem:[#allocation3 + $0x18] sm:$0xff] %vm580_vm7, %v579_v60 }
 0x2b7 PF: > { %p585_p11 = scmp.eq.s32.totalorder %s1193_s26, 1 }
 0x2b8   : > { %v590_v61 = vld [vmem:[#allocation2] sm:$0xff] (%p585_p11)  ;;  %v591_v62 = vld [vmem:[#allocation2 + $0x8] sm:$0xff] (%p585_p11)  ;;  %vm596_vm8 = vcmask (%p585_p11), 31744   ;;  %v592_v63 = vld [vmem:[#allocation2 + $0x10] sm:$0xff] (%p585_p11) }
 0x2b9   : > { %589 = sbr.rel (!%p585_p11) target bundleno = 704 (0x2c0), region = 60  ;;  %v594_v12 = vpack.c.bf16 (%p585_p11), %v591_v62, %v590_v61  ;;  %v593_v13 = vld [vmem:[#allocation2 + $0x18] sm:$0xff] (%p585_p11) }
 0x2ba   : > { %v595_v14 = vpack.c.bf16 (%p585_p11), %v593_v13, %v592_v63 }
 0x2bb   : > { %597 = vst.msk [vmem:[#allocation5] sm:$0xff] (%p585_p11), %vm596_vm8, %v594_v12 }
 0x2bc   : > { %598 = vst.msk [vmem:[#allocation5 + $0x8] sm:$0xff] (%p585_p11), %vm596_vm8, %v595_v14 }
 0x2c0 PF: > { %p962_p0 = scmp.ne.s32.totalorder %s1193_s26, 1 }
 0x2c1   : > { %614 = vmatprep.subr.bf16.mxu0 (!%p962_p0), %v1415_v9  ;;  %v604_v15 = vld [vmem:[%s1570_s4] sm:$0xf] (!%p962_p0)  ;;  %v1217_v16 = vmov (!%p962_p0), 0   ;;  %vm610_vm9 = vcmask (!%p962_p0), 261120   ;;  %v711_v9 = vld [vmem:[#allocation3 + $0x10] sm:$0xff] (!%p962_p0)  ;;  %v710_v19 = vld [vmem:[#allocation3 + $0x8] sm:$0xff] (!%p962_p0) }
 0x2c2   : > { %601 = sbr.rel (%p962_p0) target bundleno = 1196 (0x4ac), region = 64  ;;  %615 = vmatpush1.bf16.msra.mxu0 (!%p962_p0), %v1407_v6  ;;  %646 = vmatprep.mubr.bf16.mxu0 (!%p962_p0), %v1217_v16  ;;  %v678_v17 = vld [vmem:[#allocation4] sm:$0xf] (!%p962_p0)  ;;  %v712_v20 = vld [vmem:[#allocation3 + $0x18] sm:$0xff] (!%p962_p0)  ;;  %vm657_vm10 = vcmask (!%p962_p0), 1043456   ;;  %vm740_vm11 = vcmask (!%p962_p0), 1041408  }
 0x2c3   : > { %616 = vmatprep.subr.bf16.mxu0 (!%p962_p0), %v1423_v11  ;;  %1071 = vset.pattern.permute.xlu0 (!%p962_p0), %v1217_v16  ;;  %v679_v18 = vadd.f32 (!%p962_p0), 1e-06, %v678_v17  ;;  %v603_v6 = vld [vmem:[%s1569_s3] sm:$0x3] (!%p962_p0)  ;;  %v705_v57 = vld [vmem:[#allocation5] sm:$0xff] (!%p962_p0)  ;;  %vm733_vm12 = vcmask (!%p962_p0), 31744  }
 0x2c4   : > { %607 = vperm.xlu0 (!%p962_p0), %1071, %v604_v15   ;;  %779 = vmatprep.mubr.bf16.mxu1 (!%p962_p0), %v1217_v16  ;;  %v709_v11 = vld [vmem:[#allocation3] sm:$0xff] (!%p962_p0)  ;;  %v706_v58 = vld [vmem:[#allocation5 + $0x8] sm:$0xff] (!%p962_p0)  ;;  %s602_s22 = sld [smem:[#allocation6]] (!%p962_p0) }
 0x2c5   : > { %1072 = vset.pattern.permute.xlu1 (!%p962_p0), %v1217_v16 }
 0x2c6   : > { %617 = vmatpush1.bf16.msra.mxu0 (!%p962_p0), %v1419_v10  ;;  %715 = vperm.xlu1 (!%p962_p0), %1072, %v709_v11  }
 0x2c8   : > { %682 = vperm.xlu0 (!%p962_p0), %1071, %v679_v18  }
 0x2c9   : > { %963 = vmatmul.mubr.msk.bf16.vlgmr.msra.gmra.mrb[0].mxu0 %vm610_vm9, %v603_v6 }
 0x2ca   : > { %720 = vperm.xlu1 %1072, %v710_v19  }
 0x2cc   : > { %725 = vperm.xlu0 %1071, %v711_v9  }
 0x2ce   : > { %730 = vperm.xlu1 %1072, %v712_v20  }
 0x343   : > { %v608_v21 = vpop.permute.xlu0 %607 }
 0x347   : > { %v683_v48 = vpop.permute.xlu0 %682 }
 0x39c   : > { %v648_v22 = vpop.f32.mrb[0].mxu0 }
 0x39d   : > { %v649_v23 = vadd.f32 %v648_v22, %v608_v21  ;;  %v650_v24 = vpop.f32.mrb[1].mxu0 }
 0x39e   : > { %v651_v10 = vadd.f32 %v650_v24, %v608_v21  ;;  %v652_v25 = vpop.f32.mrb[2].mxu0  ;;  %v808_v24 = vstv %s602_s22 }
 0x39f   : > { %v655_v26 = vmul.f32 %v649_v23, %v649_v23  ;;  %v653_v27 = vpop.f32.mrb[3].mxu0 }
 0x3a0   : > { %v656_v28 = vmul.f32 %v651_v10, %v651_v10 }
 0x3a1   : > { %v658_v29 = vsel %vm657_vm10, %v655_v26, 0.0 }
 0x3a2   : > { %v659_v30 = vrot.slane %v658_v29, 4  ;;  %v665_v31 = vsel %vm657_vm10, %v656_v28, 0.0 }
 0x3a3   : > { %v666_v32 = vrot.slane %v665_v31, 4 }
 0x3a4   : > { %v660_v34 = vadd.f32 %v659_v30, %v658_v29 }
 0x3a5   : > { %v667_v35 = vadd.f32 %v666_v32, %v665_v31 }
 0x3a6   : > { %v661_v36 = vrot.slane %v660_v34, 2 }
 0x3a7   : > { %v668_v37 = vrot.slane %v667_v35, 2 }
 0x3a8   : > { %v662_v38 = vadd.f32 %v661_v36, %v660_v34 }
 0x3a9   : > { %v669_v39 = vadd.f32 %v668_v37, %v667_v35 }
 0x3aa   : > { %v663_v40 = vrot.slane %v662_v38, 1 }
 0x3ab   : > { %v670_v33 = vrot.slane %v669_v39, 1 }
 0x3ac   : > { %v664_v41 = vadd.f32 %v663_v40, %v662_v38 }
 0x3ad   : > { %v671_v42 = vadd.f32 %v670_v33, %v669_v39  ;;  %v726_v39 = vpop.permute.xlu0 %725 }
 0x3ae   : > { %v672_v43 = vadd.f32 1e-12, %v664_v41 }
 0x3af   : > { %v673_v44 = vadd.f32 1e-12, %v671_v42 }
 0x3b0   : > { %1073 = vrsqrt.f32 %v672_v43 }
 0x3b1   : > { %1075 = vrsqrt.f32 %v673_v44 }
 0x3ba   : > { %v1074_v45 = vpop.eup %1073 }
 0x3bb   : > { %v1076_v46 = vpop.eup %1075  ;;  %v676_v47 = vmul.f32 %v1074_v45, %v649_v23 }
 0x3bc   : > { %v677_v49 = vmul.f32 %v1076_v46, %v651_v10 }
 0x3bd   : > { %v685_v50 = vmul.f32 %v683_v48, %v676_v47  ;;  %v707_v51 = vpack.c.bf16 %v676_v47, %v676_v47 }
 0x3be   : > { %v686_v52 = vmul.f32 %v683_v48, %v677_v49  ;;  %v708_v53 = vpack.c.bf16 %v677_v49, %v677_v49 }
 0x3bf   : > { %v687_v54 = vsel %vm657_vm10, %v685_v50, 0.0  ;;  %v742_v55 = vsel %vm740_vm11, %v707_v51, 0 }
 0x3c0   : > { %v694_v56 = vsel %vm657_vm10, %v686_v52, 0.0  ;;  %964 = vmatprep.subr.msk.bf16.mxu1 %vm740_vm11, %v708_v53  ;;  %v688_v59 = vrot.slane %v687_v54, 4 }
 0x3c1   : > { %748 = vmatpush1.bf16.msra.mxu1 %v742_v55  ;;  %v695_v60 = vrot.slane %v694_v56, 4 }
 0x3c2   : > { %v689_v61 = vadd.f32 %v688_v59, %v687_v54 }
 0x3c3   : > { %v696_v62 = vadd.f32 %v695_v60, %v694_v56 }
 0x3c4   : > { %965 = vmatmul.mubr.msk.bf16.vlgmr.msra.gmra.mrb[0].mxu1 %vm733_vm12, %v705_v57  ;;  %v690_v63 = vrot.slane %v689_v61, 2 }
 0x3c5   : > { %789 = vmatprep.mubr.bf16.mxu1 %v1217_v16  ;;  %v697_v12 = vrot.slane %v696_v62, 2  ;;  %v716_v16 = vpop.permute.xlu1 %715 }
 0x3c6   : > { %v691_v13 = vadd.f32 %v690_v63, %v689_v61 }
 0x3c7   : > { %v698_v14 = vadd.f32 %v697_v12, %v696_v62 }
 0x3c8   : > { %v692_v15 = vrot.slane %v691_v13, 1 }
 0x3c9   : > { %v699_v17 = vrot.slane %v698_v14, 1  ;;  %v721_v23 = vpop.permute.xlu1 %720 }
 0x3ca   : > { %v693_v18 = vadd.f32 %v692_v15, %v691_v13 }
 0x3cb   : > { %v700_v6 = vadd.f32 %v699_v17, %v698_v14 }
 0x3cc   : > { %966 = vmatmul.mubr.msk.bf16.gmra.mrb[4].mxu1 %vm733_vm12, %v706_v58  ;;  %v701_v9 = vadd.f32 256.0, %v693_v18 }
 0x3cd   : > { %v702_v11 = vadd.f32 256.0, %v700_v6  ;;  %v731_v45 = vpop.permute.xlu1 %730 }
 0x3ce   : > { %1077 = vrcp.f32 %v701_v9 }
 0x3cf   : > { %1079 = vrcp.f32 %v702_v11 }
 0x3d8   : > { %v1078_v22 = vpop.eup %1077 }
 0x3d9   : > { %v1080_v26 = vpop.eup %1079 }
 0x497   : > { %v781_v19 = vpop.f32.mrb[0].mxu1 }
 0x498   : > { %v782_v20 = vadd.f32 %v781_v19, %v716_v16  ;;  %v783_v21 = vpop.f32.mrb[1].mxu1 }
 0x499   : > { %v784_v10 = vadd.f32 %v783_v21, %v716_v16  ;;  %v785_v25 = vpop.f32.mrb[2].mxu1 }
 0x49a   : > { %v800_v27 = vmul.f32 %v1078_v22, %v782_v20  ;;  %v786_v28 = vadd.f32 %v785_v25, %v721_v23  ;;  %v787_v29 = vpop.f32.mrb[3].mxu1 }
 0x49b   : > { %v801_v30 = vmul.f32 %v1080_v26, %v784_v10  ;;  %v788_v31 = vadd.f32 %v787_v29, %v721_v23 }
 0x49c   : > { %v809_v32 = vmul.f32 %v808_v24, %v800_v27  ;;  %v802_v34 = vmul.f32 %v1078_v22, %v786_v28 }
 0x49d   : > { %v810_v35 = vmul.f32 %v808_v24, %v801_v30  ;;  %v803_v36 = vmul.f32 %v1080_v26, %v788_v31 }
 0x49e   : > { %v817_v37 = vadd.f32 %v809_v32, %v1393_v0  ;;  %v811_v38 = vmul.f32 %v808_v24, %v802_v34 }
 0x49f   : > { %v818_v40 = vadd.f32 %v810_v35, %v1395_v1  ;;  %v812_v33 = vmul.f32 %v808_v24, %v803_v36  ;;  %v791_v41 = vpop.f32.mrb[4].mxu1 }
 0x4a0   : > { %825 = vst [vmem:[%s1425_s12] sm:$0xff] %v817_v37  ;;  %v819_v42 = vadd.f32 %v811_v38, %v1397_v2  ;;  %v792_v43 = vadd.f32 %v791_v41, %v726_v39  ;;  %v793_v44 = vpop.f32.mrb[5].mxu1 }
 0x4a1   : > { %826 = vst [vmem:[%s1425_s12 + $0x8] sm:$0xff] %v818_v40  ;;  %v820_v46 = vadd.f32 %v812_v33, %v1399_v3  ;;  %v794_v47 = vadd.f32 %v793_v44, %v726_v39  ;;  %v795_v48 = vpop.f32.mrb[6].mxu1 }
 0x4a2   : > { %827 = vst [vmem:[%s1425_s12 + $0x10] sm:$0xff] %v819_v42  ;;  %v804_v0 = vmul.f32 %v1078_v22, %v792_v43  ;;  %v796_v49 = vadd.f32 %v795_v48, %v731_v45  ;;  %v797_v1 = vpop.f32.mrb[7].mxu1 }
 0x4a3   : > { %828 = vst [vmem:[%s1425_s12 + $0x18] sm:$0xff] %v820_v46  ;;  %v805_v50 = vmul.f32 %v1080_v26, %v794_v47  ;;  %v798_v51 = vadd.f32 %v797_v1, %v731_v45 }
 0x4a4   : > { %v813_v2 = vmul.f32 %v808_v24, %v804_v0  ;;  %v806_v52 = vmul.f32 %v1078_v22, %v796_v49 }
 0x4a5   : > { %v814_v53 = vmul.f32 %v808_v24, %v805_v50  ;;  %v807_v54 = vmul.f32 %v1080_v26, %v798_v51 }
 0x4a6   : > { %v821_v55 = vadd.f32 %v813_v2, %v1401_v4  ;;  %v815_v3 = vmul.f32 %v808_v24, %v806_v52 }
 0x4a7   : > { %v822_v56 = vadd.f32 %v814_v53, %v1403_v5  ;;  %v816_v57 = vmul.f32 %v808_v24, %v807_v54 }
 0x4a8   : > { %829 = vst [vmem:[%s1425_s12 + $0x20] sm:$0xff] %v821_v55  ;;  %v823_v58 = vadd.f32 %v815_v3, %v1409_v7 }
 0x4a9   : > { %830 = vst [vmem:[%s1425_s12 + $0x28] sm:$0xff] %v822_v56  ;;  %v824_v59 = vadd.f32 %v816_v57, %v1411_v8 }
 0x4aa   : > { %831 = vst [vmem:[%s1425_s12 + $0x30] sm:$0xff] %v823_v58 }
 0x4ab   : > { %832 = vst [vmem:[%s1425_s12 + $0x38] sm:$0xff] %v824_v59 }
 0x4ac PF: > { %s975_s7 = sshll.u32 %s1197_s27, 10  ;;  %s850_s19 = sshll.u32 %s1425_s12, 4  ;;  %s1512_s19 = int_to_ptr.vmem [resolvable:$true] %s850_s19 }
 0x4ad   : > { %s1509_s21 = scalar_lea.hbm %s1572_s6, %s975_s7  ;;  %s834_s11 = scalar_lea.sflag [#allocation9], %s1384_s5 }
 0x4ae   : > { %s1111_s16 = scalar_lea.vmem %s1512_s19, 1024  ;;  %p1580_p13 = scmp.ne.s32.totalorder %s1576_s13, 0 }
 0x4af   : > { %p1112_p12 = scmp.ne.s32.totalorder %s1512_s19, %s1111_s16  ;;  %s1218_s18 = smov [#allocation10]  }
 0x4b0   : > { %s1115_s26 = sshll.u32 %s1218_s18, 4  ;;  %s1116_s26 = int_to_ptr.vmem [resolvable:$false] %s1115_s26 }
 0x4b1   : > { %p1113_p2 = pnand %p1112_p12, %p1580_p13  ;;  %s1117_s27 = scalar_lea.vmem %s1116_s26, 2048 }
 0x4b2   : > { %p1118_p3 = scmp.lt.s32.totalorder %s1512_s19, %s1116_s26  ;;  %p1119_p7 = scmp.lt.s32.totalorder %s1117_s27, %s1111_s16 }
 0x4b3   : > { %p1114_p5 = pneg %p1113_p2 }
 0x4b4   : > { %p1120_p8 = por %p1119_p7, %p1118_p3 }
 0x4b6   : > { %p1121_p1 = pnand %p1120_p8, %p1114_p5 }
 0x4b8   : > { %1124 = shalt.err (!%p1121_p1)
}
 0x4b9   : > { %s1125_s12 = scalar_lea.hbm %s1509_s21, 1024  ;;  %s1129_s7 = scalar_lea.hbm %s1572_s6, 2048 }
 0x4ba   : > { %p1126_p4 = scmp.ne.s32.totalorder %s1509_s21, %s1125_s12  ;;  %p1130_p9 = scmp.lt.u32.totalorder %s1509_s21, %s1572_s6 }
 0x4bb   : > { %p1131_p11 = scmp.lt.u32.totalorder %s1129_s7, %s1125_s12  ;;  %p1133_p12 = scmp.lt.u32.totalorder %s1125_s12, %s1509_s21 }
 0x4bc   : > { %p1127_p6 = pnand %p1126_p4, %p1580_p13 }
 0x4bd   : > { %p1132_p0 = por %p1131_p11, %p1130_p9 }
 0x4be   : > { %p1128_p10 = pneg %p1127_p6 }
 0x4bf   : > { %p1134_p2 = por %p1133_p12, %p1132_p0 }
 0x4c1   : > { %p1135_p5 = pnand %p1134_p2, %p1128_p10 }
 0x4c3   : > { %1138 = shalt.err (!%p1135_p5)
}
 0x4c4   : > { %s1219_s16 = smov 256   ;;  %s1220_s18 = smov 16  }
 0x4c5   : > { %978 = dma.vmem_to_hbm [thread:$0]  (%p1580_p13), %s1512_s19, 1024, %s1509_s21, %s834_s11, %s1219_s16, %s1219_s16, %s1220_s18  }
 0x4c6 PF: > { %p989_p3 = scmp.ge.s32.totalorder %s1209_s30, 2  ;;  %s865_s26 = sand.u32 1, %s1181_s23  }
 0x4c7   : > { %p1581_p7 = scmp.ne.s32.totalorder %s1577_s15, 0  ;;  %s866_s27 = scalar_lea.sflag [#allocation9], %s865_s26 }
 0x4c9   : > { %p985_p8 = pnand %p989_p3, %p1581_p7 }
 0x4cb   : > { %1176 = dma.done.wait (!%p985_p8), %s866_s27, 1024  }
 0x4cc   : > { %1178 = vsyncadd (!%p985_p8), %s866_s27, 4294966272  ;;  %s23_s30 = sadd.s32 1, %s1209_s30   ;;  %s1582_s23 = smov %s1185_s24 }
 0x4cd   : > { %p20_p1 = scmp.ge.s32.totalorder %s23_s30, 6   ;;  %s1583_s24 = smov %s1189_s25 }
 0x4ce   : > { %s1584_s25 = smov %s1335_s17  ;;  %s1585_s26 = smov %s1201_s28 }
 0x4cf   : > { %s1586_s27 = smov %s1205_s29  ;;  %s1587_s28 = smov %s1590_s8 }
 0x4d0   : > { %s1588_s29 = smov %s1594_s9  ;;  %22 = sbr.rel (!%p20_p1) target bundleno = 9 (0x9), region = 105 }
 0x4d7   :  { %871 = vsyncpa [#allocation8], 1 }
 0x4d8   :  { %873 = vsyncpa [#allocation8 + $0x1], 1 }
 0x4d9   :  { %874 = vsyncpa [#allocation9], 1 }
 0x4da   :  { %876 = vsyncpa [#allocation9 + $0x1], 1 }

</bundles_post_ra>
